<compile_context>
chip_gen: v6e
topology: v6e:2x2x1
jax: 0.10.0
libtpu: 0.0.40
codegen_flags: <defaults>
</compile_context>

<pallas_src>
import functools
import math

import jax
import jax.numpy as jnp
from jax import lax
from jax.experimental import pallas as pl
from jax.experimental.pallas import tpu as pltpu


_ONEHOT_MAX_VOCAB = 4096   # above this, the (T, V) one-hot operand / MXU work is wasteful
_DMA_SLOTS = 8             # outstanding row DMAs in the gather path
_MIB = 1024 * 1024


def _round_up(x: int, m: int) -> int:
    return ((x + m - 1) // m) * m


def _vmem_capacity_bytes() -> int:
    try:
        return int(pltpu.get_tpu_info().vmem_capacity_bytes)
    except Exception:
        return 64 * _MIB   # conservative default: v7x per-TensorCore VMEM


# ---------------------------------------------------------------------------
# Path A: one-hot MXU gather, table resident in VMEM.
# ---------------------------------------------------------------------------
def _embed_onehot_kernel(ids_ref, table_ref, out_ref, *, vocab_size, scale):
    # ids_ref  : (t, 1) int32 VMEM block of token ids for this grid step.
    # table_ref: (vocab_size, embed_dim) table, resident in VMEM.
    # out_ref  : (t, embed_dim) output block.
    ids = jnp.clip(ids_ref[...], 0, vocab_size - 1)                       # (t, 1)
    cols = lax.broadcasted_iota(jnp.int32, (ids.shape[0], vocab_size), 1)  # (t, V)
    onehot = (ids == cols).astype(table_ref.dtype)                         # (t, V)
    acc = jnp.dot(onehot, table_ref[...],
                  preferred_element_type=jnp.float32,
                  precision=lax.Precision.HIGHEST)                         # (t, D) f32
    out_ref[...] = (acc * scale).astype(out_ref.dtype)


def _onehot_embedding(flat_ids, table, *, t, num_blocks, scale, vmem_cap):
    vocab_size, embed_dim = table.shape
    padded_tokens = num_blocks * t
    itemsize = jnp.dtype(table.dtype).itemsize
    table_bytes = vocab_size * embed_dim * itemsize

    ids_2d = flat_ids.reshape(padded_tokens, 1)
    kernel = functools.partial(_embed_onehot_kernel, vocab_size=vocab_size, scale=scale)

    def run(single_buffer_table: bool):
        n_table_bufs = 1 if single_buffer_table else 2
        need = (n_table_bufs * table_bytes            # resident table
                + 2 * t * embed_dim * itemsize        # double-buffered output blocks
                + 2 * t * 4                           # double-buffered ids blocks
                + t * vocab_size * itemsize           # one-hot operand
                + t * embed_dim * 4                   # f32 accumulator
                + 4 * _MIB)                           # slack
        vmem_limit = int(min(max(need, 16 * _MIB), vmem_cap - 4 * _MIB))

        table_spec_kwargs = (
            dict(pipeline_mode=pl.Buffered(1)) if single_buffer_table else {})

        grid_spec = pltpu.PrefetchScalarGridSpec(
            num_scalar_prefetch=0,
            grid=(num_blocks,),
            in_specs=[
                # Per-step token ids as a lane-1 VMEM block (token index on sublanes).
                pl.BlockSpec((t, 1), lambda i: (i, 0)),
                # Whole table as one block with a constant index_map: DMAed from HBM
                # once and kept resident across all grid steps.
                pl.BlockSpec((vocab_size, embed_dim), lambda i: (0, 0),
                             **table_spec_kwargs),
            ],
            out_specs=pl.BlockSpec((t, embed_dim), lambda i: (i, 0)),
        )
        return pl.pallas_call(
            kernel,
            out_shape=jax.ShapeDtypeStruct((padded_tokens, embed_dim), table.dtype),
            grid_spec=grid_spec,
            compiler_params=pltpu.CompilerParams(
                # Blocks are independent; "parallel" lets v7x split the token-block
                # axis across its two TensorCores (each keeps its own table copy).
                # TODO(synk): evaluate pltpu.CORE_PARALLEL on v7x for explicit splitting.
                dimension_semantics=("parallel",),
                vmem_limit_bytes=vmem_limit,
            ),
        )(ids_2d, table)

    try:
        # Single-buffer the never-refetched table: halves its VMEM footprint.
        return run(single_buffer_table=True)
    except Exception:
        # pl.Buffered(1) not supported on this jax version -> default double buffering.
        return run(single_buffer_table=False)


# ---------------------------------------------------------------------------
# Path B: manual per-row DMA gather for tables that don't fit in VMEM.
# ---------------------------------------------------------------------------
def _embed_dma_gather_kernel(ids_ref, table_hbm, out_ref, row_buf, copy_sems, *,
                             block_tokens, vocab_size, scale, num_slots):
    # ids_ref  : SMEM scalar-prefetch ref with all (padded) flat token ids.
    # table_hbm: (vocab_size, embed_dim) table left in HBM (memory_space=pl.ANY).
    # out_ref  : (block_tokens, embed_dim) output block (VMEM).
    # row_buf  : (block_tokens, embed_dim) VMEM landing buffer for the row DMAs.
    # copy_sems: (num_slots,) DMA semaphores -> num_slots outstanding row copies.
    base = pl.program_id(0) * block_tokens

    def row_copy(t, slot):
        idx = jnp.clip(ids_ref[base + t], 0, vocab_size - 1)
        return pltpu.make_async_copy(
            table_hbm.at[pl.ds(idx, 1), :],
            row_buf.at[pl.ds(t, 1), :],
            copy_sems.at[slot],
        )

    # Prime num_slots outstanding row DMAs.
    for s in range(min(num_slots, block_tokens)):
        row_copy(s, s).start()

    def body(t, carry):
        slot = t % num_slots
        row_copy(t, slot).wait()

        @pl.when(t + num_slots < block_tokens)
        def _():
            row_copy(t + num_slots, slot).start()

        return carry

    lax.fori_loop(0, block_tokens, body, 0)

    # All rows have landed: apply the sqrt(embed_dim) scale at tile level (f32)
    # and emit one dense, lane-aligned (block_tokens, embed_dim) store.
    out_ref[...] = (row_buf[...].astype(jnp.float32) * scale).astype(out_ref.dtype)


def _dma_gather_embedding(flat_ids, table, *, t, num_blocks, scale, vmem_cap):
    vocab_size, embed_dim = table.shape
    padded_tokens = num_blocks * t
    itemsize = jnp.dtype(table.dtype).itemsize
    num_slots = min(_DMA_SLOTS, t)

    kernel = functools.partial(
        _embed_dma_gather_kernel,
        block_tokens=t, vocab_size=vocab_size, scale=scale, num_slots=num_slots)

    need = 3 * t * embed_dim * itemsize + 4 * _MIB   # 2x out blocks + row_buf + slack
    vmem_limit = int(min(max(need, 16 * _MIB), vmem_cap // 2))

    # TODO(synk): add a VMEM-resident 8/16-row group-gather path for medium vocab
    # (table fits VMEM but vocab > _ONEHOT_MAX_VOCAB) to avoid redundant HBM row reads.
    grid_spec = pltpu.PrefetchScalarGridSpec(
        # Ids drive the DMA source addresses, so they are scalar-prefetched into SMEM.
        num_scalar_prefetch=1,
        grid=(num_blocks,),
        in_specs=[pl.BlockSpec(memory_space=pl.ANY)],   # table stays in HBM
        out_specs=pl.BlockSpec((t, embed_dim), lambda i, ids: (i, 0)),
        scratch_shapes=[
            pltpu.VMEM((t, embed_dim), table.dtype),
            pltpu.SemaphoreType.DMA((num_slots,)),
        ],
    )
    return pl.pallas_call(
        kernel,
        out_shape=jax.ShapeDtypeStruct((padded_tokens, embed_dim), table.dtype),
        grid_spec=grid_spec,
        compiler_params=pltpu.CompilerParams(
            dimension_semantics=("parallel",),
            vmem_limit_bytes=vmem_limit,
        ),
    )(flat_ids, table)


# ---------------------------------------------------------------------------
# Wrapper: path selection + padding.
# ---------------------------------------------------------------------------
def embedding_forward(ids: jax.Array, table: jax.Array, *, block_tokens: int = 256,
                      force_path: str | None = None) -> jax.Array:
    """out[..., :] = table[ids[...], :] * sqrt(embed_dim) as a Pallas TPU kernel."""
    vocab_size, embed_dim = table.shape
    orig_shape = tuple(ids.shape)
    num_tokens = int(math.prod(orig_shape)) if orig_shape else 1
    scale = float(math.sqrt(embed_dim))

    flat_ids = ids.reshape(num_tokens).astype(jnp.int32)

    # Sublane-aligned token block (multiple of 8, no larger than needed).
    t = _round_up(min(block_tokens, _round_up(num_tokens, 8)), 8)
    num_blocks = pl.cdiv(num_tokens, t)
    padded_tokens = num_blocks * t
    if padded_tokens != num_tokens:
        flat_ids = jnp.pad(flat_ids, (0, padded_tokens - num_tokens))

    itemsize = jnp.dtype(table.dtype).itemsize
    table_bytes = vocab_size * embed_dim * itemsize

    # Generation-aware VMEM budget: spend at most ~40% of per-core VMEM on the
    # resident table + working set (~25 MiB on v7x, ~51 MiB on v5e/v6e).
    vmem_cap = _vmem_capacity_bytes()
    resident_budget = int(0.4 * vmem_cap)
    onehot_ok = (
        vocab_size <= _ONEHOT_MAX_VOCAB
        and (table_bytes + t * vocab_size * itemsize + 3 * t * embed_dim * 4 + 2 * _MIB)
            <= resident_budget
    )

    path = force_path if force_path is not None else ("onehot" if onehot_ok else "dma")
    if path == "onehot":
        out_flat = _onehot_embedding(flat_ids, table, t=t, num_blocks=num_blocks,
                                     scale=scale, vmem_cap=vmem_cap)
    elif path == "dma":
        out_flat = _dma_gather_embedding(flat_ids, table, t=t, num_blocks=num_blocks,
                                         scale=scale, vmem_cap=vmem_cap)
    else:
        raise ValueError(f"unknown path {path!r}")

    if padded_tokens != num_tokens:
        out_flat = out_flat[:num_tokens]
    return out_flat.reshape(orig_shape + (embed_dim,))


if __name__ == "__main__":
    vocab_size, embed_dim = 128, 128
    batch, seq = 2, 8

    key = jax.random.PRNGKey(0)
    k_table, k_ids = jax.random.split(key)

    # nn.Embedding default init: weight ~ N(0, 1).
    table = jax.random.normal(k_table, (vocab_size, embed_dim), dtype=jnp.float32)
    ids = jax.random.randint(k_ids, (batch, seq), 0, vocab_size, dtype=jnp.int32)

    ref = table[ids] * math.sqrt(embed_dim)

    # Fast path: one-hot MXU gather with the table resident in VMEM.
    out = jax.block_until_ready(embedding_forward(ids, table))
    assert out.shape == (batch, seq, embed_dim)
    assert jnp.allclose(out, ref, atol=1e-4, rtol=1e-4), "one-hot path mismatch"

    # Large-table path (forced here at small shapes): per-row HBM->VMEM DMA gather.
    out_dma = jax.block_until_ready(embedding_forward(ids, table, force_path="dma"))
    assert jnp.allclose(out_dma, ref, atol=1e-5, rtol=1e-5), "dma-gather path mismatch"

    print("KERNEL_OK")
</pallas_src>

<mosaic_0001>
module attributes {stable_mosaic.version = 11 : i64} {
  func.func @_embed_onehot_kernel(%arg0: i32, %arg1: memref<16x1xi32, #tpu.memory_space<vmem>>, %arg2: memref<128x128xf32, #tpu.memory_space<vmem>>, %arg3: memref<16x128xf32, #tpu.memory_space<vmem>>) attributes {dimension_semantics = [#tpu.dimension_semantics<parallel>], iteration_bounds = array<i64: 1>, scalar_prefetch = 0 : i64, scratch_operands = 0 : i64, tpu.core_type = #tpu.core_type<tc>, window_params = [{transform_indices = @transform_0, window_bounds = array<i64: 16, 1>}, {pipeline_mode = #tpu.pipeline_mode<synchronous>, transform_indices = @transform_1, window_bounds = array<i64: 128, 128>}, {transform_indices = @transform_2, window_bounds = array<i64: 16, 128>}]} {
    %c0 = arith.constant 0 : index
    %c0_0 = arith.constant 0 : index
    %0 = vector.load %arg1[%c0, %c0_0] : memref<16x1xi32, #tpu.memory_space<vmem>>, vector<16x1xi32>
    %c0_i32 = arith.constant 0 : i32
    %c127_i32 = arith.constant 127 : i32
    %1 = vector.broadcast %c0_i32 : i32 to vector<16x1xi32>
    %2 = arith.maxsi %1, %0 : vector<16x1xi32>
    %3 = vector.broadcast %c127_i32 : i32 to vector<16x1xi32>
    %4 = arith.minsi %3, %2 : vector<16x1xi32>
    %5 = tpu.iota {dimensions = array<i32: 1>} : vector<16x128xi32>
    %6 = vector.broadcast %4 : vector<16x1xi32> to vector<16x128xi32>
    %7 = arith.cmpi eq, %6, %5 : vector<16x128xi32>
    %8 = arith.extui %7 : vector<16x128xi1> to vector<16x128xi32>
    %9 = arith.sitofp %8 : vector<16x128xi32> to vector<16x128xf32>
    %c0_1 = arith.constant 0 : index
    %c0_2 = arith.constant 0 : index
    %10 = vector.load %arg2[%c0_1, %c0_2] : memref<128x128xf32, #tpu.memory_space<vmem>>, vector<128x128xf32>
    %cst = arith.constant dense<0.000000e+00> : vector<16x128xf32>
    %11 = tpu.matmul %9, %10, %cst {dimension_numbers = #tpu.dot_dimension_numbers<[1], [0], [0], [1], [0, 0, 1, 1], [], []>, precision = #tpu.contract_precision<fp32>} : vector<16x128xf32>, vector<128x128xf32>, vector<16x128xf32> -> vector<16x128xf32>
    %cst_3 = arith.constant 11.3137083 : f32
    %12 = vector.broadcast %cst_3 : f32 to vector<16x128xf32>
    %13 = arith.mulf %11, %12 : vector<16x128xf32>
    %c0_4 = arith.constant 0 : index
    %c0_5 = arith.constant 0 : index
    %14 = vector.load %arg3[%c0_4, %c0_5] : memref<16x128xf32, #tpu.memory_space<vmem>>, vector<16x128xf32>
    tpu.vector_store %arg3[%c0_4, %c0_5], %13 {strides = array<i32>} : memref<16x128xf32, #tpu.memory_space<vmem>>, vector<16x128xf32>,
    return
  }
  func.func @transform_0(%arg0: i32) -> (i32, i32) {
    %c0_i32 = arith.constant 0 : i32
    %c0_i32_0 = arith.constant 0 : i32
    return %arg0, %c0_i32 : i32, i32
  }
  func.func @transform_1(%arg0: i32) -> (i32, i32) {
    %c0_i32 = arith.constant 0 : i32
    %c0_i32_0 = arith.constant 0 : i32
    %c0_i32_1 = arith.constant 0 : i32
    return %c0_i32, %c0_i32_0 : i32, i32
  }
  func.func @transform_2(%arg0: i32) -> (i32, i32) {
    %c0_i32 = arith.constant 0 : i32
    %c0_i32_0 = arith.constant 0 : i32
    return %arg0, %c0_i32 : i32, i32
  }
}

module attributes {stable_mosaic.version = 11 : i64} {
  func.func @_embed_onehot_kernel(%arg0: i32, %arg1: memref<16x1xi32, #tpu.memory_space<vmem>>, %arg2: memref<128x128xf32, #tpu.memory_space<vmem>>, %arg3: memref<16x128xf32, #tpu.memory_space<vmem>>) attributes {dimension_semantics = [#tpu.dimension_semantics<parallel>], iteration_bounds = array<i64: 1>, scalar_prefetch = 0 : i64, scratch_operands = 0 : i64, tpu.core_type = #tpu.core_type<tc>, window_params = [{transform_indices = @transform_0, window_bounds = array<i64: 16, 1>}, {pipeline_mode = #tpu.pipeline_mode<synchronous>, transform_indices = @transform_1, window_bounds = array<i64: 128, 128>}, {transform_indices = @transform_2, window_bounds = array<i64: 16, 128>}]} {
    %c0 = arith.constant 0 : index
    %c0_0 = arith.constant 0 : index
    %0 = vector.load %arg1[%c0, %c0_0] : memref<16x1xi32, #tpu.memory_space<vmem>>, vector<16x1xi32>
    %c0_i32 = arith.constant 0 : i32
    %c127_i32 = arith.constant 127 : i32
    %1 = vector.broadcast %c0_i32 : i32 to vector<16x1xi32>
    %2 = arith.maxsi %1, %0 : vector<16x1xi32>
    %3 = vector.broadcast %c127_i32 : i32 to vector<16x1xi32>
    %4 = arith.minsi %3, %2 : vector<16x1xi32>
    %5 = tpu.iota {dimensions = array<i32: 1>} : vector<16x128xi32>
    %6 = vector.broadcast %4 : vector<16x1xi32> to vector<16x128xi32>
    %7 = arith.cmpi eq, %6, %5 : vector<16x128xi32>
    %8 = arith.extui %7 : vector<16x128xi1> to vector<16x128xi32>
    %9 = arith.sitofp %8 : vector<16x128xi32> to vector<16x128xf32>
    %c0_1 = arith.constant 0 : index
    %c0_2 = arith.constant 0 : index
    %10 = vector.load %arg2[%c0_1, %c0_2] : memref<128x128xf32, #tpu.memory_space<vmem>>, vector<128x128xf32>
    %cst = arith.constant dense<0.000000e+00> : vector<16x128xf32>
    %11 = tpu.matmul %9, %10, %cst {dimension_numbers = #tpu.dot_dimension_numbers<[1], [0], [0], [1], [0, 0, 1, 1], [], []>, precision = #tpu.contract_precision<fp32>} : vector<16x128xf32>, vector<128x128xf32>, vector<16x128xf32> -> vector<16x128xf32>
    %cst_3 = arith.constant 11.3137083 : f32
    %12 = vector.broadcast %cst_3 : f32 to vector<16x128xf32>
    %13 = arith.mulf %11, %12 : vector<16x128xf32>
    %c0_4 = arith.constant 0 : index
    %c0_5 = arith.constant 0 : index
    %14 = vector.load %arg3[%c0_4, %c0_5] : memref<16x128xf32, #tpu.memory_space<vmem>>, vector<16x128xf32>
    tpu.vector_store %arg3[%c0_4, %c0_5], %13 {strides = array<i32>} : memref<16x128xf32, #tpu.memory_space<vmem>>, vector<16x128xf32>,
    return
  }
  func.func @transform_0(%arg0: i32) -> (i32, i32) {
    %c0_i32 = arith.constant 0 : i32
    %c0_i32_0 = arith.constant 0 : i32
    return %arg0, %c0_i32 : i32, i32
  }
  func.func @transform_1(%arg0: i32) -> (i32, i32) {
    %c0_i32 = arith.constant 0 : i32
    %c0_i32_0 = arith.constant 0 : i32
    %c0_i32_1 = arith.constant 0 : i32
    return %c0_i32, %c0_i32_0 : i32, i32
  }
  func.func @transform_2(%arg0: i32) -> (i32, i32) {
    %c0_i32 = arith.constant 0 : i32
    %c0_i32_0 = arith.constant 0 : i32
    return %arg0, %c0_i32 : i32, i32
  }
}

</mosaic_0001>

<bundles_post_ra>
// kernel: tpu_custom_call.1
= control target key start
LH: loop header
LB: loop body
LE: loop exit
PB: predicated region body
PF: predicated region fallthrough
CT: control target
= control target key end

     0   :  { %7 = vsyncpa [#allocation3], 0  ;;  %s1554_s0 = inlined_call_operand.vmem [shape: s32[16,1], index: 0, kind: input, shape index: {}]   ;;  %s1555_s1 = inlined_call_operand.hbm [shape: f32[128,128], index: 1, kind: input, shape index: {}]   ;;  %s1556_s2 = inlined_call_operand.hbm [shape: f32[16,128], index: 2, kind: output, shape index: {}]  }
   0x1   :  { %8 = vsyncpa [#allocation4], 0  ;;  %s1149_s9 = smov [#allocation2]  }
   0x2   :  { %s16_s10 = sshll.u32 %s1149_s9, 4  ;;  %s17_s10 = int_to_ptr.vmem [resolvable:$true] %s16_s10 }
   0x3   :  { %s1113_s11 = scalar_lea.vmem %s17_s10, 2048  ;;  %p1118_p1 = scmp.lt.s32.totalorder %s17_s10, %s17_s10 }
   0x4   :  { %p1114_p0 = scmp.ne.s32.totalorder %s17_s10, %s1113_s11  ;;  %p1119_p2 = scmp.lt.s32.totalorder %s1113_s11, %s1113_s11 }
   0x6   :  { %p1120_p3 = por %p1119_p2, %p1118_p1 }
   0x8   :  { %p1121_p4 = pnand %p1120_p3, %p1114_p0 }
   0xa   :  { %1124 = shalt.err (!%p1121_p4)
}
   0xb   :  { %s1150_s12 = smov 128   ;;  %s1151_s13 = smov 8  }
   0xc   :  { %22 = dma.hbm_to_vmem [thread:$0]  %s1555_s1, 2048, %s17_s10, [#allocation3], %s1150_s12, %s1150_s12, %s1151_s13  }
   0xd   :  { %1145 = dma.done.wait [#allocation3], 2048  }
   0xe   :  { %1146 = vsyncadd [#allocation3], 4294965248  ;;  %v1152_v0 = vmov 0   ;;  %v26_v1 = vld [vmem:[%s1554_s0] sm:$0xff]  ;;  %v27_v2 = vld [vmem:[%s1554_s0 + $0x8] sm:$0xff]  ;;  %s1155_s0 = smov [#allocation5]  }
   0xf   :  { %1104 = vset.pattern.permute.xlu0 %v1152_v0  ;;  %v65_v3 = vld [vmem:[#allocation2 + $0x78] sm:$0xff]  ;;  %vm28_vm0 = vcmp.gt.s32.totalorder %v26_v1, 0  ;;  %vm30_vm1 = vcmp.gt.s32.totalorder %v27_v2, 0  ;;  %v64_v5 = vld [vmem:[#allocation2 + $0x70] sm:$0xff]  ;;  %v63_v6 = vld [vmem:[#allocation2 + $0x68] sm:$0xff]  ;;  %s759_s1 = sshll.u32 %s1155_s0, 4  ;;  %s760_s1 = int_to_ptr.vmem [resolvable:$true] %s759_s1 }
  0x10   :  { %v1183_v4 = vand.u32 4294901760, %v65_v3  ;;  %v62_v7 = vld [vmem:[#allocation2 + $0x60] sm:$0xff]  ;;  %v29_v8 = vsel %vm28_vm0, %v26_v1, 0  ;;  %v31_v9 = vsel %vm30_vm1, %v27_v2, 0  ;;  %v1185_v10 = vand.u32 4294901760, %v64_v5  ;;  %v61_v12 = vld [vmem:[#allocation2 + $0x58] sm:$0xff]  ;;  %p1130_p6 = scmp.lt.s32.totalorder %s760_s1, %s760_s1 }
  0x11   :  { %v1187_v11 = vand.u32 4294901760, %v63_v6  ;;  %v60_v13 = vld [vmem:[#allocation2 + $0x50] sm:$0xff]  ;;  %vm32_vm2 = vcmp.lt.s32.totalorder %v29_v8, 127  ;;  %vm34_vm3 = vcmp.lt.s32.totalorder %v31_v9, 127  ;;  %v1192_v15 = vand.u32 4294901760, %v62_v7  ;;  %v59_v16 = vld [vmem:[#allocation2 + $0x48] sm:$0xff] }
  0x12   :  { %v1190_v14 = vsub.f32 %v65_v3, %v1183_v4  ;;  %887 = vmatprep.subr.mxu0 %v1183_v4  ;;  %v58_v17 = vld [vmem:[#allocation2 + $0x40] sm:$0xff]  ;;  %v33_v18 = vsel %vm32_vm2, %v29_v8, 127  ;;  %v35_v19 = vsel %vm34_vm3, %v31_v9, 127  ;;  %v1196_v20 = vsub.f32 %v64_v5, %v1185_v10  ;;  %v57_v38 = vld [vmem:[#allocation2 + $0x38] sm:$0xff]  ;;  %v56_v43 = vld [vmem:[#allocation2 + $0x30] sm:$0xff]  ;;  %s1125_s20 = scalar_lea.vmem %s760_s1, 256 }
  0x13   :  { %v1199_v21 = vsub.f32 %v63_v6, %v1187_v11  ;;  %888 = vmatpush3.msra.mxu0 %v1183_v4  ;;  %39 = vperm.xlu0 %1104, %v33_v18   ;;  %v1206_v23 = vsub.f32 %v62_v7, %v1192_v15  ;;  %v1208_v24 = vand.u32 4294901760, %v61_v12  ;;  %v1210_v25 = vand.u32 4294901760, %v60_v13  ;;  %v55_v44 = vld [vmem:[#allocation2 + $0x28] sm:$0xff]  ;;  %v54_v47 = vld [vmem:[#allocation2 + $0x20] sm:$0xff]  ;;  %v53_v54 = vld [vmem:[#allocation2 + $0x18] sm:$0xff]  ;;  %p1126_p5 = scmp.ne.s32.totalorder %s760_s1, %s1125_s20  ;;  %p1131_p7 = scmp.lt.s32.totalorder %s1125_s20, %s1125_s20 }
  0x14   :  { %v1203_v22 = vand.u32 4294901760, %v1190_v14  ;;  %889 = vmatprep.subr.mxu0 %v1185_v10  ;;  %v1214_v26 = vand.u32 4294901760, %v1196_v20  ;;  %v1220_v28 = vand.u32 4294901760, %v59_v16  ;;  %v1222_v29 = vand.u32 4294901760, %v58_v17  ;;  %v52_v61 = vld [vmem:[#allocation2 + $0x10] sm:$0xff]  ;;  %v51_v3 = vld [vmem:[#allocation2 + $0x8] sm:$0xff] }
  0x15   :  { %v1217_v27 = vand.u32 4294901760, %v1199_v21  ;;  %890 = vmatpush3.msra.mxu0 %v1185_v10  ;;  %v1227_v31 = vand.u32 4294901760, %v1206_v23  ;;  %v1230_v32 = vsub.f32 %v61_v12, %v1208_v24  ;;  %v1233_v33 = vsub.f32 %v60_v13, %v1210_v25  ;;  %v50_v12 = vld [vmem:[#allocation2] sm:$0xff]  ;;  %p1132_p8 = por %p1131_p7, %p1130_p6 }
  0x16   :  { %v171_v30 = vsub.f32 %v1190_v14, %v1203_v22  ;;  %891 = vmatprep.subr.mxu0 %v1187_v11  ;;  %v178_v34 = vsub.f32 %v1196_v20, %v1214_v26  ;;  %v1241_v36 = vsub.f32 %v59_v16, %v1220_v28  ;;  %v1245_v37 = vsub.f32 %v58_v17, %v1222_v29 }
  0x17   :  { %v185_v35 = vsub.f32 %v1199_v21, %v1217_v27  ;;  %892 = vmatpush3.msra.mxu0 %v1187_v11  ;;  %42 = vperm.xlu0 %1104, %v35_v19   ;;  %v192_v40 = vsub.f32 %v1206_v23, %v1227_v31  ;;  %v1250_v41 = vand.u32 4294901760, %v1230_v32  ;;  %v1253_v42 = vand.u32 4294901760, %v1233_v33  ;;  %p1133_p9 = pnand %p1132_p8, %p1126_p5 }
  0x18   :  { %v172_v39 = vand.u32 4294901760, %v171_v30  ;;  %893 = vmatprep.subr.mxu0 %v1192_v15  ;;  %v179_v45 = vand.u32 4294901760, %v178_v34  ;;  %v1257_v46 = vand.u32 4294901760, %v1241_v36  ;;  %v1262_v50 = vand.u32 4294901760, %v57_v38 }
  0x19   :  { %894 = vmatpush3.msra.mxu0 %v1192_v15  ;;  %v186_v48 = vand.u32 4294901760, %v185_v35  ;;  %v199_v49 = vsub.f32 %v1230_v32, %v1250_v41  ;;  %v1266_v51 = vand.u32 4294901760, %v1245_v37  ;;  %v1269_v52 = vand.u32 4294901760, %v56_v43 }
  0x1a   :  { %922 = vmatprep.subr.mxu1 %v172_v39  ;;  %895 = vmatprep.subr.mxu0 %v1208_v24  ;;  %v1271_v53 = vand.u32 4294901760, %v55_v44  ;;  %v193_v55 = vand.u32 4294901760, %v192_v40  ;;  %v206_v56 = vsub.f32 %v1233_v33, %v1253_v42  ;;  %v1276_v57 = vsub.f32 %v57_v38, %v1262_v50 }
  0x1b   :  { %923 = vmatpush3.msra.mxu1 %v172_v39  ;;  %896 = vmatpush3.msra.mxu0 %v1208_v24  ;;  %v1279_v58 = vand.u32 4294901760, %v54_v47  ;;  %v213_v59 = vsub.f32 %v1241_v36, %v1257_v46  ;;  %v1284_v60 = vsub.f32 %v56_v43, %v1269_v52  ;;  %v200_v62 = vand.u32 4294901760, %v199_v49 }
  0x1c   :  { %924 = vmatprep.subr.mxu1 %v179_v45  ;;  %897 = vmatprep.subr.mxu0 %v1210_v25  ;;  %v1288_v63 = vand.u32 4294901760, %v1276_v57  ;;  %v1291_v0 = vsub.f32 %v55_v44, %v1271_v53  ;;  %v1294_v1 = vand.u32 4294901760, %v53_v54  ;;  %v220_v2 = vsub.f32 %v1245_v37, %v1266_v51 }
  0x1d   :  { %925 = vmatpush3.msra.mxu1 %v179_v45  ;;  %898 = vmatpush3.msra.mxu0 %v1210_v25  ;;  %v207_v5 = vand.u32 4294901760, %v206_v56  ;;  %v1300_v6 = vand.u32 4294901760, %v1284_v60  ;;  %v1303_v7 = vsub.f32 %v54_v47, %v1279_v58  ;;  %v1306_v8 = vand.u32 4294901760, %v52_v61 }
  0x1e   :  { %926 = vmatprep.subr.mxu1 %v186_v48  ;;  %899 = vmatprep.subr.mxu0 %v1220_v28  ;;  %v214_v9 = vand.u32 4294901760, %v213_v59  ;;  %v227_v13 = vsub.f32 %v1276_v57, %v1288_v63  ;;  %v1312_v16 = vand.u32 4294901760, %v1291_v0  ;;  %v1315_v17 = vsub.f32 %v53_v54, %v1294_v1 }
  0x1f   :  { %927 = vmatpush3.msra.mxu1 %v186_v48  ;;  %900 = vmatpush3.msra.mxu0 %v1220_v28  ;;  %v1318_v18 = vand.u32 4294901760, %v51_v3  ;;  %v221_v19 = vand.u32 4294901760, %v220_v2  ;;  %v234_v30 = vsub.f32 %v1284_v60, %v1300_v6  ;;  %v1324_v34 = vand.u32 4294901760, %v1303_v7 }
  0x20   :  { %928 = vmatprep.subr.mxu1 %v193_v55  ;;  %901 = vmatprep.subr.mxu0 %v1222_v29  ;;  %v1327_v35 = vsub.f32 %v52_v61, %v1306_v8  ;;  %v1330_v38 = vand.u32 4294901760, %v50_v12  ;;  %v228_v39 = vand.u32 4294901760, %v227_v13  ;;  %v241_v40 = vsub.f32 %v1291_v0, %v1312_v16 }
  0x21   :  { %929 = vmatpush3.msra.mxu1 %v193_v55  ;;  %902 = vmatpush3.msra.mxu0 %v1222_v29  ;;  %v1336_v43 = vand.u32 4294901760, %v1315_v17  ;;  %v1339_v44 = vsub.f32 %v51_v3, %v1318_v18  ;;  %v235_v45 = vand.u32 4294901760, %v234_v30  ;;  %v248_v47 = vsub.f32 %v1303_v7, %v1324_v34 }
  0x22   :  { %930 = vmatprep.subr.mxu1 %v200_v62  ;;  %903 = vmatprep.subr.mxu0 %v1262_v50  ;;  %v1346_v48 = vand.u32 4294901760, %v1327_v35  ;;  %v1349_v49 = vsub.f32 %v50_v12, %v1330_v38  ;;  %v242_v54 = vand.u32 4294901760, %v241_v40  ;;  %v1153_v40 = vmov 0.0  }
  0x23   :  { %931 = vmatpush3.msra.mxu1 %v200_v62  ;;  %904 = vmatpush3.msra.mxu0 %v1262_v50  ;;  %v255_v55 = vsub.f32 %v1315_v17, %v1336_v43  ;;  %v1356_v56 = vand.u32 4294901760, %v1339_v44  ;;  %v249_v59 = vand.u32 4294901760, %v248_v47  ;;  %v1154_v47 = vmov 1.0  }
  0x24   :  { %932 = vmatprep.subr.mxu1 %v207_v5  ;;  %905 = vmatprep.subr.mxu0 %v1269_v52  ;;  %v262_v61 = vsub.f32 %v1327_v35, %v1346_v48  ;;  %v1363_v62 = vand.u32 4294901760, %v1349_v49 }
  0x25   :  { %933 = vmatpush3.msra.mxu1 %v207_v5  ;;  %906 = vmatpush3.msra.mxu0 %v1269_v52  ;;  %v256_v2 = vand.u32 4294901760, %v255_v55  ;;  %v269_v3 = vsub.f32 %v1339_v44, %v1356_v56 }
  0x26   :  { %934 = vmatprep.subr.mxu1 %v214_v9  ;;  %907 = vmatprep.subr.mxu0 %v1271_v53  ;;  %v263_v5 = vand.u32 4294901760, %v262_v61 }
  0x27   :  { %935 = vmatpush3.msra.mxu1 %v214_v9  ;;  %908 = vmatpush3.msra.mxu0 %v1271_v53  ;;  %v276_v9 = vsub.f32 %v1349_v49, %v1363_v62  ;;  %v270_v12 = vand.u32 4294901760, %v269_v3 }
  0x28   :  { %936 = vmatprep.subr.mxu1 %v221_v19  ;;  %909 = vmatprep.subr.mxu0 %v1279_v58 }
  0x29   :  { %937 = vmatpush3.msra.mxu1 %v221_v19  ;;  %910 = vmatpush3.msra.mxu0 %v1279_v58  ;;  %v277_v13 = vand.u32 4294901760, %v276_v9  ;;  %v36_v19 = vlaneseq }
  0x2a   :  { %938 = vmatprep.subr.mxu1 %v228_v39  ;;  %911 = vmatprep.subr.mxu0 %v1294_v1 }
  0x2b   :  { %939 = vmatpush3.msra.mxu1 %v228_v39  ;;  %912 = vmatpush3.msra.mxu0 %v1294_v1  ;;  %v1377_v30 = vand.u32 127, %v36_v19 }
  0x2c   :  { %940 = vmatprep.subr.mxu1 %v235_v45  ;;  %913 = vmatprep.subr.mxu0 %v1306_v8 }
  0x2d   :  { %941 = vmatpush3.msra.mxu1 %v235_v45  ;;  %914 = vmatpush3.msra.mxu0 %v1306_v8 }
  0x2e   :  { %942 = vmatprep.subr.mxu1 %v242_v54  ;;  %915 = vmatprep.subr.mxu0 %v1318_v18 }
  0x2f   :  { %943 = vmatpush3.msra.mxu1 %v242_v54  ;;  %916 = vmatpush3.msra.mxu0 %v1318_v18 }
  0x30   :  { %944 = vmatprep.subr.mxu1 %v249_v59  ;;  %917 = vmatprep.subr.mxu0 %v1330_v38 }
  0x31   :  { %945 = vmatpush3.msra.mxu1 %v249_v59  ;;  %918 = vmatpush3.msra.mxu0 %v1330_v38 }
  0x32   :  { %946 = vmatprep.subr.mxu1 %v256_v2  ;;  %957 = vmatprep.subr.mxu0 %v1190_v14 }
  0x33   :  { %947 = vmatpush3.msra.mxu1 %v256_v2 }
  0x34   :  { %948 = vmatprep.subr.mxu1 %v263_v5 }
  0x35   :  { %949 = vmatpush3.msra.mxu1 %v263_v5 }
  0x36   :  { %950 = vmatprep.subr.mxu1 %v270_v12 }
  0x37   :  { %951 = vmatpush3.msra.mxu1 %v270_v12 }
  0x38   :  { %952 = vmatprep.subr.mxu1 %v277_v13 }
  0x39   :  { %953 = vmatpush3.msra.mxu1 %v277_v13 }
  0x3a   :  { %992 = vmatprep.subr.mxu1 %v1183_v4 }
  0x8e   :  { %v1379_v39 = vpop.permute.xlu0 %39 }
  0x8f   :  { %vm44_vm4 = vcmp.eq.s32.totalorder %v1379_v39, %v1377_v30 }
  0x90   :  { %v771_v45 = vsel %vm44_vm4, 1.0, %v1153_v40  ;;  %954 = vmatprep.mubr.msk.f32.mxu1 %vm44_vm4, %v1154_v47 }
  0x91   :  { %v148_v54 = vsub.f32 %v771_v45, %v771_v45 }
  0x92   :  { %v1390_v55 = vpop.permute.xlu0 %42 }
  0x93   :  { %vm45_vm5 = vcmp.eq.s32.totalorder %v1390_v55, %v1377_v30  ;;  %v149_v59 = vand.u32 4294901760, %v148_v54 }
  0x94   :  { %v772_v61 = vsel %vm45_vm5, 1.0, %v1153_v40  ;;  %955 = vmatmul.mubr.msk.f32.vlgmr.msra.gmra.mxu1 %vm45_vm5, %v1154_v47 }
  0x95   :  { %v1401_v2 = vsub.f32 %v772_v61, %v772_v61  ;;  %993 = vmatpush3.msra.mxu1 %v1183_v4  ;;  %1024 = vmatprep.mubr.f32.mxu1 %v149_v59  ;;  %v150_v3 = vsub.f32 %v148_v54, %v149_v59 }
  0x96   :  { %994 = vmatprep.subr.mxu1 %v1185_v10 }
  0x97   :  { %995 = vmatpush3.msra.mxu1 %v1185_v10  ;;  %v151_v5 = vand.u32 4294901760, %v150_v3  ;;  %v159_v9 = vand.u32 4294901760, %v1401_v2 }
  0x98   :  { %996 = vmatprep.subr.mxu1 %v1187_v11 }
  0x99   :  { %997 = vmatpush3.msra.mxu1 %v1187_v11  ;;  %919 = vmatprep.mubr.f32.mxu0 %v151_v5  ;;  %v160_v12 = vsub.f32 %v1401_v2, %v159_v9 }
  0x9a   :  { %998 = vmatprep.subr.mxu1 %v1192_v15 }
  0x9b   :  { %999 = vmatpush3.msra.mxu1 %v1192_v15  ;;  %v161_v13 = vand.u32 4294901760, %v160_v12 }
  0x9c   :  { %1000 = vmatprep.subr.mxu1 %v1208_v24 }
  0x9d   :  { %1001 = vmatpush3.msra.mxu1 %v1208_v24  ;;  %920 = vmatmul.mubr.f32.vlgmr.msra.gmra.mxu0 %v161_v13 }
  0x9e   :  { %958 = vmatpush3.msra.mxu0 %v1190_v14  ;;  %1002 = vmatprep.subr.mxu1 %v1210_v25 }
  0x9f   :  { %959 = vmatprep.subr.mxu0 %v1196_v20  ;;  %989 = vmatprep.mubr.f32.mxu0 %v148_v54 }
  0xa0   :  { %1003 = vmatpush3.msra.mxu1 %v1210_v25  ;;  %960 = vmatpush3.msra.mxu0 %v1196_v20 }
  0xa1   :  { %1004 = vmatprep.subr.mxu1 %v1220_v28  ;;  %961 = vmatprep.subr.mxu0 %v1199_v21 }
  0xa2   :  { %1005 = vmatpush3.msra.mxu1 %v1220_v28  ;;  %962 = vmatpush3.msra.mxu0 %v1199_v21 }
  0xa3   :  { %1006 = vmatprep.subr.mxu1 %v1222_v29  ;;  %963 = vmatprep.subr.mxu0 %v1206_v23 }
  0xa4   :  { %1007 = vmatpush3.msra.mxu1 %v1222_v29  ;;  %964 = vmatpush3.msra.mxu0 %v1206_v23 }
  0xa5   :  { %1008 = vmatprep.subr.mxu1 %v1262_v50  ;;  %965 = vmatprep.subr.mxu0 %v1230_v32 }
  0xa6   :  { %1009 = vmatpush3.msra.mxu1 %v1262_v50  ;;  %966 = vmatpush3.msra.mxu0 %v1230_v32 }
  0xa7   :  { %1010 = vmatprep.subr.mxu1 %v1269_v52  ;;  %967 = vmatprep.subr.mxu0 %v1233_v33 }
  0xa8   :  { %1011 = vmatpush3.msra.mxu1 %v1269_v52  ;;  %968 = vmatpush3.msra.mxu0 %v1233_v33 }
  0xa9   :  { %1012 = vmatprep.subr.mxu1 %v1271_v53  ;;  %969 = vmatprep.subr.mxu0 %v1241_v36 }
  0xaa   :  { %1013 = vmatpush3.msra.mxu1 %v1271_v53  ;;  %970 = vmatpush3.msra.mxu0 %v1241_v36 }
  0xab   :  { %1014 = vmatprep.subr.mxu1 %v1279_v58  ;;  %971 = vmatprep.subr.mxu0 %v1245_v37 }
  0xac   :  { %1015 = vmatpush3.msra.mxu1 %v1279_v58  ;;  %972 = vmatpush3.msra.mxu0 %v1245_v37 }
  0xad   :  { %1016 = vmatprep.subr.mxu1 %v1294_v1  ;;  %973 = vmatprep.subr.mxu0 %v1276_v57 }
  0xae   :  { %1017 = vmatpush3.msra.mxu1 %v1294_v1  ;;  %974 = vmatpush3.msra.mxu0 %v1276_v57 }
  0xaf   :  { %1018 = vmatprep.subr.mxu1 %v1306_v8  ;;  %975 = vmatprep.subr.mxu0 %v1284_v60 }
  0xb0   :  { %1019 = vmatpush3.msra.mxu1 %v1306_v8  ;;  %976 = vmatpush3.msra.mxu0 %v1284_v60 }
  0xb1   :  { %1020 = vmatprep.subr.mxu1 %v1318_v18  ;;  %977 = vmatprep.subr.mxu0 %v1291_v0 }
  0xb2   :  { %1021 = vmatpush3.msra.mxu1 %v1318_v18  ;;  %978 = vmatpush3.msra.mxu0 %v1291_v0 }
  0xb3   :  { %1022 = vmatprep.subr.mxu1 %v1330_v38  ;;  %979 = vmatprep.subr.mxu0 %v1303_v7 }
  0xb4   :  { %1023 = vmatpush3.msra.mxu1 %v1330_v38  ;;  %980 = vmatpush3.msra.mxu0 %v1303_v7 }
  0xb5   :  { %1025 = vmatmul.mubr.f32.vlgmr.msra.gmra.mxu1 %v159_v9  ;;  %1062 = vmatprep.subr.mxu1 %v1183_v4 }
  0xb6   :  { %981 = vmatprep.subr.mxu0 %v1315_v17  ;;  %1063 = vmatpush3.msra.mxu1 %v1183_v4 }
  0xb7   :  { %1094 = vmatprep.mubr.msk.f32.mxu1 %vm44_vm4, %v1154_v47  ;;  %982 = vmatpush3.msra.mxu0 %v1315_v17 }
  0xb8   :  { %1064 = vmatprep.subr.mxu1 %v1185_v10  ;;  %983 = vmatprep.subr.mxu0 %v1327_v35 }
  0xb9   :  { %1065 = vmatpush3.msra.mxu1 %v1185_v10  ;;  %984 = vmatpush3.msra.mxu0 %v1327_v35 }
  0xba   :  { %1066 = vmatprep.subr.mxu1 %v1187_v11  ;;  %985 = vmatprep.subr.mxu0 %v1339_v44 }
  0xbb   :  { %1067 = vmatpush3.msra.mxu1 %v1187_v11  ;;  %986 = vmatpush3.msra.mxu0 %v1339_v44 }
  0xbc   :  { %1068 = vmatprep.subr.mxu1 %v1192_v15  ;;  %987 = vmatprep.subr.mxu0 %v1349_v49 }
  0xbd   :  { %1069 = vmatpush3.msra.mxu1 %v1192_v15  ;;  %988 = vmatpush3.msra.mxu0 %v1349_v49 }
  0xbe   :  { %1070 = vmatprep.subr.mxu1 %v1208_v24  ;;  %990 = vmatmul.mubr.f32.vlgmr.msra.gmra.mxu0 %v1401_v2 }
  0xbf   :  { %1027 = vmatprep.subr.mxu0 %v1203_v22  ;;  %1071 = vmatpush3.msra.mxu1 %v1208_v24 }
  0xc0   :  { %1028 = vmatpush3.msra.mxu0 %v1203_v22  ;;  %1059 = vmatprep.mubr.msk.f32.mxu0 %vm44_vm4, %v1154_v47 }
  0xc1   :  { %1072 = vmatprep.subr.mxu1 %v1210_v25  ;;  %1029 = vmatprep.subr.mxu0 %v1214_v26 }
  0xc2   :  { %1073 = vmatpush3.msra.mxu1 %v1210_v25  ;;  %1030 = vmatpush3.msra.mxu0 %v1214_v26 }
  0xc3   :  { %1074 = vmatprep.subr.mxu1 %v1220_v28  ;;  %1031 = vmatprep.subr.mxu0 %v1217_v27 }
  0xc4   :  { %1075 = vmatpush3.msra.mxu1 %v1220_v28  ;;  %1032 = vmatpush3.msra.mxu0 %v1217_v27 }
  0xc5   :  { %1076 = vmatprep.subr.mxu1 %v1222_v29  ;;  %1033 = vmatprep.subr.mxu0 %v1227_v31 }
  0xc6   :  { %1077 = vmatpush3.msra.mxu1 %v1222_v29  ;;  %1034 = vmatpush3.msra.mxu0 %v1227_v31 }
  0xc7   :  { %1078 = vmatprep.subr.mxu1 %v1262_v50  ;;  %1035 = vmatprep.subr.mxu0 %v1250_v41 }
  0xc8   :  { %1079 = vmatpush3.msra.mxu1 %v1262_v50  ;;  %1036 = vmatpush3.msra.mxu0 %v1250_v41 }
  0xc9   :  { %1080 = vmatprep.subr.mxu1 %v1269_v52  ;;  %1037 = vmatprep.subr.mxu0 %v1253_v42 }
  0xca   :  { %1081 = vmatpush3.msra.mxu1 %v1269_v52  ;;  %1038 = vmatpush3.msra.mxu0 %v1253_v42 }
  0xcb   :  { %1082 = vmatprep.subr.mxu1 %v1271_v53  ;;  %1039 = vmatprep.subr.mxu0 %v1257_v46 }
  0xcc   :  { %1083 = vmatpush3.msra.mxu1 %v1271_v53  ;;  %1040 = vmatpush3.msra.mxu0 %v1257_v46 }
  0xcd   :  { %1084 = vmatprep.subr.mxu1 %v1279_v58  ;;  %1041 = vmatprep.subr.mxu0 %v1266_v51 }
  0xce   :  { %1085 = vmatpush3.msra.mxu1 %v1279_v58  ;;  %1042 = vmatpush3.msra.mxu0 %v1266_v51 }
  0xcf   :  { %1086 = vmatprep.subr.mxu1 %v1294_v1  ;;  %1043 = vmatprep.subr.mxu0 %v1288_v63 }
  0xd0   :  { %1087 = vmatpush3.msra.mxu1 %v1294_v1  ;;  %1044 = vmatpush3.msra.mxu0 %v1288_v63 }
  0xd1   :  { %1088 = vmatprep.subr.mxu1 %v1306_v8  ;;  %1045 = vmatprep.subr.mxu0 %v1300_v6 }
  0xd2   :  { %1089 = vmatpush3.msra.mxu1 %v1306_v8  ;;  %1046 = vmatpush3.msra.mxu0 %v1300_v6 }
  0xd3   :  { %1090 = vmatprep.subr.mxu1 %v1318_v18  ;;  %1047 = vmatprep.subr.mxu0 %v1312_v16 }
  0xd4   :  { %1091 = vmatpush3.msra.mxu1 %v1318_v18  ;;  %1048 = vmatpush3.msra.mxu0 %v1312_v16 }
  0xd5   :  { %1092 = vmatprep.subr.mxu1 %v1330_v38  ;;  %1049 = vmatprep.subr.mxu0 %v1324_v34 }
  0xd6   :  { %1093 = vmatpush3.msra.mxu1 %v1330_v38  ;;  %1050 = vmatpush3.msra.mxu0 %v1324_v34 }
  0xd7   :  { %1095 = vmatmul.mubr.msk.f32.vlgmr.msra.gmra.mxu1 %vm45_vm5, %v1154_v47  ;;  %1051 = vmatprep.subr.mxu0 %v1336_v43 }
  0xd8   :  { %1052 = vmatpush3.msra.mxu0 %v1336_v43 }
  0xd9   :  { %1053 = vmatprep.subr.mxu0 %v1346_v48 }
  0xda   :  { %1054 = vmatpush3.msra.mxu0 %v1346_v48 }
  0xdb   :  { %1055 = vmatprep.subr.mxu0 %v1356_v56 }
  0xdc   :  { %1056 = vmatpush3.msra.mxu0 %v1356_v56 }
  0xdd   :  { %1057 = vmatprep.subr.mxu0 %v1363_v62 }
  0xde   :  { %1058 = vmatpush3.msra.mxu0 %v1363_v62 }
  0xdf   :  { %1060 = vmatmul.mubr.msk.f32.vlgmr.msra.gmra.mxu0 %vm45_vm5, %v1154_v47 }
 0x154   :  { %v956_v10 = vpop.f32.mrf.mxu1 }
 0x156   :  { %v314_v15 = vpop.f32.mrf.mxu1 }
 0x15d   :  { %v921_v4 = vpop.f32.mrf.mxu0 }
 0x15e   :  { %v321_v20 = vadd.f32 %v956_v10, %v921_v4 }
 0x15f   :  { %v153_v11 = vpop.f32.mrf.mxu0 }
 0x160   :  { %v315_v23 = vadd.f32 %v314_v15, %v153_v11 }
 0x175   :  { %v1026_v21 = vpop.f32.mrf.mxu1 }
 0x177   :  { %v520_v26 = vpop.f32.mrf.mxu1 }
 0x17e   :  { %v991_v14 = vpop.f32.mrf.mxu0 }
 0x17f   :  { %v432_v24 = vadd.f32 %v991_v14, %v321_v20 }
 0x180   :  { %v424_v22 = vpop.f32.mrf.mxu0 }
 0x181   :  { %v425_v25 = vadd.f32 %v424_v22, %v315_v23  ;;  %v529_v27 = vadd.f32 %v1026_v21, %v432_v24 }
 0x183   :  { %v521_v32 = vadd.f32 %v520_v26, %v425_v25 }
 0x197   :  { %v1096_v28 = vpop.f32.mrf.mxu1 }
 0x199   :  { %v740_v41 = vpop.f32.mrf.mxu1 }
 0x19f   :  { %v1061_v29 = vpop.f32.mrf.mxu0 }
 0x1a0   :  { %v654_v31 = vadd.f32 %v1061_v29, %v529_v27 }
 0x1a1   :  { %v647_v33 = vpop.f32.mrf.mxu0 }
 0x1a2   :  { %v747_v36 = vadd.f32 %v1096_v28, %v654_v31  ;;  %v648_v37 = vadd.f32 %v647_v33, %v521_v32 }
 0x1a4   :  { %v751_v42 = vmul.f32 11.313708, %v747_v36  ;;  %v741_v46 = vadd.f32 %v740_v41, %v648_v37 }
 0x1a6   :  { %753 = vst [vmem:[#allocation5 + $0x8] sm:$0xff] %v751_v42  ;;  %v750_v50 = vmul.f32 11.313708, %v741_v46 }
 0x1a8   :  { %752 = vst [vmem:[#allocation5] sm:$0xff] %v750_v50 }
 0x1a9   :  { %1136 = shalt.err (!%p1133_p9)
}
 0x1aa   :  { %765 = dma.vmem_to_hbm [thread:$0]  %s760_s1, 256, %s1556_s2, [#allocation4], %s1150_s12, %s1150_s12, %s1151_s13  }
 0x1ab   :  { %1147 = dma.done.wait [#allocation4], 256  }
 0x1ac   :  { %1148 = vsyncadd [#allocation4], 4294967040 }
 0x1ad   :  { %769 = vsyncpa [#allocation3], 1 }
 0x1ae   :  { %770 = vsyncpa [#allocation4], 1 }

// kernel: tpu_custom_call.1
= control target key start
LH: loop header
LB: loop body
LE: loop exit
PB: predicated region body
PF: predicated region fallthrough
CT: control target
= control target key end

     0   :  { %7 = vsyncpa [#allocation3], 0  ;;  %s1554_s0 = inlined_call_operand.vmem [shape: s32[16,1], index: 0, kind: input, shape index: {}]   ;;  %s1555_s1 = inlined_call_operand.hbm [shape: f32[128,128], index: 1, kind: input, shape index: {}]   ;;  %s1556_s2 = inlined_call_operand.hbm [shape: f32[16,128], index: 2, kind: output, shape index: {}]  }
   0x1   :  { %8 = vsyncpa [#allocation4], 0  ;;  %s1149_s9 = smov [#allocation2]  }
   0x2   :  { %s16_s10 = sshll.u32 %s1149_s9, 4  ;;  %s17_s10 = int_to_ptr.vmem [resolvable:$true] %s16_s10 }
   0x3   :  { %s1113_s11 = scalar_lea.vmem %s17_s10, 2048  ;;  %p1118_p1 = scmp.lt.s32.totalorder %s17_s10, %s17_s10 }
   0x4   :  { %p1114_p0 = scmp.ne.s32.totalorder %s17_s10, %s1113_s11  ;;  %p1119_p2 = scmp.lt.s32.totalorder %s1113_s11, %s1113_s11 }
   0x6   :  { %p1120_p3 = por %p1119_p2, %p1118_p1 }
   0x8   :  { %p1121_p4 = pnand %p1120_p3, %p1114_p0 }
   0xa   :  { %1124 = shalt.err (!%p1121_p4)
}
   0xb   :  { %s1150_s12 = smov 128   ;;  %s1151_s13 = smov 8  }
   0xc   :  { %22 = dma.hbm_to_vmem [thread:$0]  %s1555_s1, 2048, %s17_s10, [#allocation3], %s1150_s12, %s1150_s12, %s1151_s13  }
   0xd   :  { %1145 = dma.done.wait [#allocation3], 2048  }
   0xe   :  { %1146 = vsyncadd [#allocation3], 4294965248  ;;  %v1152_v0 = vmov 0   ;;  %v26_v1 = vld [vmem:[%s1554_s0] sm:$0xff]  ;;  %v27_v2 = vld [vmem:[%s1554_s0 + $0x8] sm:$0xff]  ;;  %s1155_s0 = smov [#allocation5]  }
   0xf   :  { %1104 = vset.pattern.permute.xlu0 %v1152_v0  ;;  %v65_v3 = vld [vmem:[#allocation2 + $0x78] sm:$0xff]  ;;  %vm28_vm0 = vcmp.gt.s32.totalorder %v26_v1, 0  ;;  %vm30_vm1 = vcmp.gt.s32.totalorder %v27_v2, 0  ;;  %v64_v5 = vld [vmem:[#allocation2 + $0x70] sm:$0xff]  ;;  %v63_v6 = vld [vmem:[#allocation2 + $0x68] sm:$0xff]  ;;  %s759_s1 = sshll.u32 %s1155_s0, 4  ;;  %s760_s1 = int_to_ptr.vmem [resolvable:$true] %s759_s1 }
  0x10   :  { %v1183_v4 = vand.u32 4294901760, %v65_v3  ;;  %v62_v7 = vld [vmem:[#allocation2 + $0x60] sm:$0xff]  ;;  %v29_v8 = vsel %vm28_vm0, %v26_v1, 0  ;;  %v31_v9 = vsel %vm30_vm1, %v27_v2, 0  ;;  %v1185_v10 = vand.u32 4294901760, %v64_v5  ;;  %v61_v12 = vld [vmem:[#allocation2 + $0x58] sm:$0xff]  ;;  %p1130_p6 = scmp.lt.s32.totalorder %s760_s1, %s760_s1 }
  0x11   :  { %v1187_v11 = vand.u32 4294901760, %v63_v6  ;;  %v60_v13 = vld [vmem:[#allocation2 + $0x50] sm:$0xff]  ;;  %vm32_vm2 = vcmp.lt.s32.totalorder %v29_v8, 127  ;;  %vm34_vm3 = vcmp.lt.s32.totalorder %v31_v9, 127  ;;  %v1192_v15 = vand.u32 4294901760, %v62_v7  ;;  %v59_v16 = vld [vmem:[#allocation2 + $0x48] sm:$0xff] }
  0x12   :  { %v1190_v14 = vsub.f32 %v65_v3, %v1183_v4  ;;  %887 = vmatprep.subr.mxu0 %v1183_v4  ;;  %v58_v17 = vld [vmem:[#allocation2 + $0x40] sm:$0xff]  ;;  %v33_v18 = vsel %vm32_vm2, %v29_v8, 127  ;;  %v35_v19 = vsel %vm34_vm3, %v31_v9, 127  ;;  %v1196_v20 = vsub.f32 %v64_v5, %v1185_v10  ;;  %v57_v38 = vld [vmem:[#allocation2 + $0x38] sm:$0xff]  ;;  %v56_v43 = vld [vmem:[#allocation2 + $0x30] sm:$0xff]  ;;  %s1125_s20 = scalar_lea.vmem %s760_s1, 256 }
  0x13   :  { %v1199_v21 = vsub.f32 %v63_v6, %v1187_v11  ;;  %888 = vmatpush3.msra.mxu0 %v1183_v4  ;;  %39 = vperm.xlu0 %1104, %v33_v18   ;;  %v1206_v23 = vsub.f32 %v62_v7, %v1192_v15  ;;  %v1208_v24 = vand.u32 4294901760, %v61_v12  ;;  %v1210_v25 = vand.u32 4294901760, %v60_v13  ;;  %v55_v44 = vld [vmem:[#allocation2 + $0x28] sm:$0xff]  ;;  %v54_v47 = vld [vmem:[#allocation2 + $0x20] sm:$0xff]  ;;  %v53_v54 = vld [vmem:[#allocation2 + $0x18] sm:$0xff]  ;;  %p1126_p5 = scmp.ne.s32.totalorder %s760_s1, %s1125_s20  ;;  %p1131_p7 = scmp.lt.s32.totalorder %s1125_s20, %s1125_s20 }
  0x14   :  { %v1203_v22 = vand.u32 4294901760, %v1190_v14  ;;  %889 = vmatprep.subr.mxu0 %v1185_v10  ;;  %v1214_v26 = vand.u32 4294901760, %v1196_v20  ;;  %v1220_v28 = vand.u32 4294901760, %v59_v16  ;;  %v1222_v29 = vand.u32 4294901760, %v58_v17  ;;  %v52_v61 = vld [vmem:[#allocation2 + $0x10] sm:$0xff]  ;;  %v51_v3 = vld [vmem:[#allocation2 + $0x8] sm:$0xff] }
  0x15   :  { %v1217_v27 = vand.u32 4294901760, %v1199_v21  ;;  %890 = vmatpush3.msra.mxu0 %v1185_v10  ;;  %v1227_v31 = vand.u32 4294901760, %v1206_v23  ;;  %v1230_v32 = vsub.f32 %v61_v12, %v1208_v24  ;;  %v1233_v33 = vsub.f32 %v60_v13, %v1210_v25  ;;  %v50_v12 = vld [vmem:[#allocation2] sm:$0xff]  ;;  %p1132_p8 = por %p1131_p7, %p1130_p6 }
  0x16   :  { %v171_v30 = vsub.f32 %v1190_v14, %v1203_v22  ;;  %891 = vmatprep.subr.mxu0 %v1187_v11  ;;  %v178_v34 = vsub.f32 %v1196_v20, %v1214_v26  ;;  %v1241_v36 = vsub.f32 %v59_v16, %v1220_v28  ;;  %v1245_v37 = vsub.f32 %v58_v17, %v1222_v29 }
  0x17   :  { %v185_v35 = vsub.f32 %v1199_v21, %v1217_v27  ;;  %892 = vmatpush3.msra.mxu0 %v1187_v11  ;;  %42 = vperm.xlu0 %1104, %v35_v19   ;;  %v192_v40 = vsub.f32 %v1206_v23, %v1227_v31  ;;  %v1250_v41 = vand.u32 4294901760, %v1230_v32  ;;  %v1253_v42 = vand.u32 4294901760, %v1233_v33  ;;  %p1133_p9 = pnand %p1132_p8, %p1126_p5 }
  0x18   :  { %v172_v39 = vand.u32 4294901760, %v171_v30  ;;  %893 = vmatprep.subr.mxu0 %v1192_v15  ;;  %v179_v45 = vand.u32 4294901760, %v178_v34  ;;  %v1257_v46 = vand.u32 4294901760, %v1241_v36  ;;  %v1262_v50 = vand.u32 4294901760, %v57_v38 }
  0x19   :  { %894 = vmatpush3.msra.mxu0 %v1192_v15  ;;  %v186_v48 = vand.u32 4294901760, %v185_v35  ;;  %v199_v49 = vsub.f32 %v1230_v32, %v1250_v41  ;;  %v1266_v51 = vand.u32 4294901760, %v1245_v37  ;;  %v1269_v52 = vand.u32 4294901760, %v56_v43 }
  0x1a   :  { %922 = vmatprep.subr.mxu1 %v172_v39  ;;  %895 = vmatprep.subr.mxu0 %v1208_v24  ;;  %v1271_v53 = vand.u32 4294901760, %v55_v44  ;;  %v193_v55 = vand.u32 4294901760, %v192_v40  ;;  %v206_v56 = vsub.f32 %v1233_v33, %v1253_v42  ;;  %v1276_v57 = vsub.f32 %v57_v38, %v1262_v50 }
  0x1b   :  { %923 = vmatpush3.msra.mxu1 %v172_v39  ;;  %896 = vmatpush3.msra.mxu0 %v1208_v24  ;;  %v1279_v58 = vand.u32 4294901760, %v54_v47  ;;  %v213_v59 = vsub.f32 %v1241_v36, %v1257_v46  ;;  %v1284_v60 = vsub.f32 %v56_v43, %v1269_v52  ;;  %v200_v62 = vand.u32 4294901760, %v199_v49 }
  0x1c   :  { %924 = vmatprep.subr.mxu1 %v179_v45  ;;  %897 = vmatprep.subr.mxu0 %v1210_v25  ;;  %v1288_v63 = vand.u32 4294901760, %v1276_v57  ;;  %v1291_v0 = vsub.f32 %v55_v44, %v1271_v53  ;;  %v1294_v1 = vand.u32 4294901760, %v53_v54  ;;  %v220_v2 = vsub.f32 %v1245_v37, %v1266_v51 }
  0x1d   :  { %925 = vmatpush3.msra.mxu1 %v179_v45  ;;  %898 = vmatpush3.msra.mxu0 %v1210_v25  ;;  %v207_v5 = vand.u32 4294901760, %v206_v56  ;;  %v1300_v6 = vand.u32 4294901760, %v1284_v60  ;;  %v1303_v7 = vsub.f32 %v54_v47, %v1279_v58  ;;  %v1306_v8 = vand.u32 4294901760, %v52_v61 }
  0x1e   :  { %926 = vmatprep.subr.mxu1 %v186_v48  ;;  %899 = vmatprep.subr.mxu0 %v1220_v28  ;;  %v214_v9 = vand.u32 4294901760, %v213_v59  ;;  %v227_v13 = vsub.f32 %v1276_v57, %v1288_v63  ;;  %v1312_v16 = vand.u32 4294901760, %v1291_v0  ;;  %v1315_v17 = vsub.f32 %v53_v54, %v1294_v1 }
  0x1f   :  { %927 = vmatpush3.msra.mxu1 %v186_v48  ;;  %900 = vmatpush3.msra.mxu0 %v1220_v28  ;;  %v1318_v18 = vand.u32 4294901760, %v51_v3  ;;  %v221_v19 = vand.u32 4294901760, %v220_v2  ;;  %v234_v30 = vsub.f32 %v1284_v60, %v1300_v6  ;;  %v1324_v34 = vand.u32 4294901760, %v1303_v7 }
  0x20   :  { %928 = vmatprep.subr.mxu1 %v193_v55  ;;  %901 = vmatprep.subr.mxu0 %v1222_v29  ;;  %v1327_v35 = vsub.f32 %v52_v61, %v1306_v8  ;;  %v1330_v38 = vand.u32 4294901760, %v50_v12  ;;  %v228_v39 = vand.u32 4294901760, %v227_v13  ;;  %v241_v40 = vsub.f32 %v1291_v0, %v1312_v16 }
  0x21   :  { %929 = vmatpush3.msra.mxu1 %v193_v55  ;;  %902 = vmatpush3.msra.mxu0 %v1222_v29  ;;  %v1336_v43 = vand.u32 4294901760, %v1315_v17  ;;  %v1339_v44 = vsub.f32 %v51_v3, %v1318_v18  ;;  %v235_v45 = vand.u32 4294901760, %v234_v30  ;;  %v248_v47 = vsub.f32 %v1303_v7, %v1324_v34 }
  0x22   :  { %930 = vmatprep.subr.mxu1 %v200_v62  ;;  %903 = vmatprep.subr.mxu0 %v1262_v50  ;;  %v1346_v48 = vand.u32 4294901760, %v1327_v35  ;;  %v1349_v49 = vsub.f32 %v50_v12, %v1330_v38  ;;  %v242_v54 = vand.u32 4294901760, %v241_v40  ;;  %v1153_v40 = vmov 0.0  }
  0x23   :  { %931 = vmatpush3.msra.mxu1 %v200_v62  ;;  %904 = vmatpush3.msra.mxu0 %v1262_v50  ;;  %v255_v55 = vsub.f32 %v1315_v17, %v1336_v43  ;;  %v1356_v56 = vand.u32 4294901760, %v1339_v44  ;;  %v249_v59 = vand.u32 4294901760, %v248_v47  ;;  %v1154_v47 = vmov 1.0  }
  0x24   :  { %932 = vmatprep.subr.mxu1 %v207_v5  ;;  %905 = vmatprep.subr.mxu0 %v1269_v52  ;;  %v262_v61 = vsub.f32 %v1327_v35, %v1346_v48  ;;  %v1363_v62 = vand.u32 4294901760, %v1349_v49 }
  0x25   :  { %933 = vmatpush3.msra.mxu1 %v207_v5  ;;  %906 = vmatpush3.msra.mxu0 %v1269_v52  ;;  %v256_v2 = vand.u32 4294901760, %v255_v55  ;;  %v269_v3 = vsub.f32 %v1339_v44, %v1356_v56 }
  0x26   :  { %934 = vmatprep.subr.mxu1 %v214_v9  ;;  %907 = vmatprep.subr.mxu0 %v1271_v53  ;;  %v263_v5 = vand.u32 4294901760, %v262_v61 }
  0x27   :  { %935 = vmatpush3.msra.mxu1 %v214_v9  ;;  %908 = vmatpush3.msra.mxu0 %v1271_v53  ;;  %v276_v9 = vsub.f32 %v1349_v49, %v1363_v62  ;;  %v270_v12 = vand.u32 4294901760, %v269_v3 }
  0x28   :  { %936 = vmatprep.subr.mxu1 %v221_v19  ;;  %909 = vmatprep.subr.mxu0 %v1279_v58 }
  0x29   :  { %937 = vmatpush3.msra.mxu1 %v221_v19  ;;  %910 = vmatpush3.msra.mxu0 %v1279_v58  ;;  %v277_v13 = vand.u32 4294901760, %v276_v9  ;;  %v36_v19 = vlaneseq }
  0x2a   :  { %938 = vmatprep.subr.mxu1 %v228_v39  ;;  %911 = vmatprep.subr.mxu0 %v1294_v1 }
  0x2b   :  { %939 = vmatpush3.msra.mxu1 %v228_v39  ;;  %912 = vmatpush3.msra.mxu0 %v1294_v1  ;;  %v1377_v30 = vand.u32 127, %v36_v19 }
  0x2c   :  { %940 = vmatprep.subr.mxu1 %v235_v45  ;;  %913 = vmatprep.subr.mxu0 %v1306_v8 }
  0x2d   :  { %941 = vmatpush3.msra.mxu1 %v235_v45  ;;  %914 = vmatpush3.msra.mxu0 %v1306_v8 }
  0x2e   :  { %942 = vmatprep.subr.mxu1 %v242_v54  ;;  %915 = vmatprep.subr.mxu0 %v1318_v18 }
  0x2f   :  { %943 = vmatpush3.msra.mxu1 %v242_v54  ;;  %916 = vmatpush3.msra.mxu0 %v1318_v18 }
  0x30   :  { %944 = vmatprep.subr.mxu1 %v249_v59  ;;  %917 = vmatprep.subr.mxu0 %v1330_v38 }
  0x31   :  { %945 = vmatpush3.msra.mxu1 %v249_v59  ;;  %918 = vmatpush3.msra.mxu0 %v1330_v38 }
  0x32   :  { %946 = vmatprep.subr.mxu1 %v256_v2  ;;  %957 = vmatprep.subr.mxu0 %v1190_v14 }
  0x33   :  { %947 = vmatpush3.msra.mxu1 %v256_v2 }
  0x34   :  { %948 = vmatprep.subr.mxu1 %v263_v5 }
  0x35   :  { %949 = vmatpush3.msra.mxu1 %v263_v5 }
  0x36   :  { %950 = vmatprep.subr.mxu1 %v270_v12 }
  0x37   :  { %951 = vmatpush3.msra.mxu1 %v270_v12 }
  0x38   :  { %952 = vmatprep.subr.mxu1 %v277_v13 }
  0x39   :  { %953 = vmatpush3.msra.mxu1 %v277_v13 }
  0x3a   :  { %992 = vmatprep.subr.mxu1 %v1183_v4 }
  0x8e   :  { %v1379_v39 = vpop.permute.xlu0 %39 }
  0x8f   :  { %vm44_vm4 = vcmp.eq.s32.totalorder %v1379_v39, %v1377_v30 }
  0x90   :  { %v771_v45 = vsel %vm44_vm4, 1.0, %v1153_v40  ;;  %954 = vmatprep.mubr.msk.f32.mxu1 %vm44_vm4, %v1154_v47 }
  0x91   :  { %v148_v54 = vsub.f32 %v771_v45, %v771_v45 }
  0x92   :  { %v1390_v55 = vpop.permute.xlu0 %42 }
  0x93   :  { %vm45_vm5 = vcmp.eq.s32.totalorder %v1390_v55, %v1377_v30  ;;  %v149_v59 = vand.u32 4294901760, %v148_v54 }
  0x94   :  { %v772_v61 = vsel %vm45_vm5, 1.0, %v1153_v40  ;;  %955 = vmatmul.mubr.msk.f32.vlgmr.msra.gmra.mxu1 %vm45_vm5, %v1154_v47 }
  0x95   :  { %v1401_v2 = vsub.f32 %v772_v61, %v772_v61  ;;  %993 = vmatpush3.msra.mxu1 %v1183_v4  ;;  %1024 = vmatprep.mubr.f32.mxu1 %v149_v59  ;;  %v150_v3 = vsub.f32 %v148_v54, %v149_v59 }
  0x96   :  { %994 = vmatprep.subr.mxu1 %v1185_v10 }
  0x97   :  { %995 = vmatpush3.msra.mxu1 %v1185_v10  ;;  %v151_v5 = vand.u32 4294901760, %v150_v3  ;;  %v159_v9 = vand.u32 4294901760, %v1401_v2 }
  0x98   :  { %996 = vmatprep.subr.mxu1 %v1187_v11 }
  0x99   :  { %997 = vmatpush3.msra.mxu1 %v1187_v11  ;;  %919 = vmatprep.mubr.f32.mxu0 %v151_v5  ;;  %v160_v12 = vsub.f32 %v1401_v2, %v159_v9 }
  0x9a   :  { %998 = vmatprep.subr.mxu1 %v1192_v15 }
  0x9b   :  { %999 = vmatpush3.msra.mxu1 %v1192_v15  ;;  %v161_v13 = vand.u32 4294901760, %v160_v12 }
  0x9c   :  { %1000 = vmatprep.subr.mxu1 %v1208_v24 }
  0x9d   :  { %1001 = vmatpush3.msra.mxu1 %v1208_v24  ;;  %920 = vmatmul.mubr.f32.vlgmr.msra.gmra.mxu0 %v161_v13 }
  0x9e   :  { %958 = vmatpush3.msra.mxu0 %v1190_v14  ;;  %1002 = vmatprep.subr.mxu1 %v1210_v25 }
  0x9f   :  { %959 = vmatprep.subr.mxu0 %v1196_v20  ;;  %989 = vmatprep.mubr.f32.mxu0 %v148_v54 }
  0xa0   :  { %1003 = vmatpush3.msra.mxu1 %v1210_v25  ;;  %960 = vmatpush3.msra.mxu0 %v1196_v20 }
  0xa1   :  { %1004 = vmatprep.subr.mxu1 %v1220_v28  ;;  %961 = vmatprep.subr.mxu0 %v1199_v21 }
  0xa2   :  { %1005 = vmatpush3.msra.mxu1 %v1220_v28  ;;  %962 = vmatpush3.msra.mxu0 %v1199_v21 }
  0xa3   :  { %1006 = vmatprep.subr.mxu1 %v1222_v29  ;;  %963 = vmatprep.subr.mxu0 %v1206_v23 }
  0xa4   :  { %1007 = vmatpush3.msra.mxu1 %v1222_v29  ;;  %964 = vmatpush3.msra.mxu0 %v1206_v23 }
  0xa5   :  { %1008 = vmatprep.subr.mxu1 %v1262_v50  ;;  %965 = vmatprep.subr.mxu0 %v1230_v32 }
  0xa6   :  { %1009 = vmatpush3.msra.mxu1 %v1262_v50  ;;  %966 = vmatpush3.msra.mxu0 %v1230_v32 }
  0xa7   :  { %1010 = vmatprep.subr.mxu1 %v1269_v52  ;;  %967 = vmatprep.subr.mxu0 %v1233_v33 }
  0xa8   :  { %1011 = vmatpush3.msra.mxu1 %v1269_v52  ;;  %968 = vmatpush3.msra.mxu0 %v1233_v33 }
  0xa9   :  { %1012 = vmatprep.subr.mxu1 %v1271_v53  ;;  %969 = vmatprep.subr.mxu0 %v1241_v36 }
  0xaa   :  { %1013 = vmatpush3.msra.mxu1 %v1271_v53  ;;  %970 = vmatpush3.msra.mxu0 %v1241_v36 }
  0xab   :  { %1014 = vmatprep.subr.mxu1 %v1279_v58  ;;  %971 = vmatprep.subr.mxu0 %v1245_v37 }
  0xac   :  { %1015 = vmatpush3.msra.mxu1 %v1279_v58  ;;  %972 = vmatpush3.msra.mxu0 %v1245_v37 }
  0xad   :  { %1016 = vmatprep.subr.mxu1 %v1294_v1  ;;  %973 = vmatprep.subr.mxu0 %v1276_v57 }
  0xae   :  { %1017 = vmatpush3.msra.mxu1 %v1294_v1  ;;  %974 = vmatpush3.msra.mxu0 %v1276_v57 }
  0xaf   :  { %1018 = vmatprep.subr.mxu1 %v1306_v8  ;;  %975 = vmatprep.subr.mxu0 %v1284_v60 }
  0xb0   :  { %1019 = vmatpush3.msra.mxu1 %v1306_v8  ;;  %976 = vmatpush3.msra.mxu0 %v1284_v60 }
  0xb1   :  { %1020 = vmatprep.subr.mxu1 %v1318_v18  ;;  %977 = vmatprep.subr.mxu0 %v1291_v0 }
  0xb2   :  { %1021 = vmatpush3.msra.mxu1 %v1318_v18  ;;  %978 = vmatpush3.msra.mxu0 %v1291_v0 }
  0xb3   :  { %1022 = vmatprep.subr.mxu1 %v1330_v38  ;;  %979 = vmatprep.subr.mxu0 %v1303_v7 }
  0xb4   :  { %1023 = vmatpush3.msra.mxu1 %v1330_v38  ;;  %980 = vmatpush3.msra.mxu0 %v1303_v7 }
  0xb5   :  { %1025 = vmatmul.mubr.f32.vlgmr.msra.gmra.mxu1 %v159_v9  ;;  %1062 = vmatprep.subr.mxu1 %v1183_v4 }
  0xb6   :  { %981 = vmatprep.subr.mxu0 %v1315_v17  ;;  %1063 = vmatpush3.msra.mxu1 %v1183_v4 }
  0xb7   :  { %1094 = vmatprep.mubr.msk.f32.mxu1 %vm44_vm4, %v1154_v47  ;;  %982 = vmatpush3.msra.mxu0 %v1315_v17 }
  0xb8   :  { %1064 = vmatprep.subr.mxu1 %v1185_v10  ;;  %983 = vmatprep.subr.mxu0 %v1327_v35 }
  0xb9   :  { %1065 = vmatpush3.msra.mxu1 %v1185_v10  ;;  %984 = vmatpush3.msra.mxu0 %v1327_v35 }
  0xba   :  { %1066 = vmatprep.subr.mxu1 %v1187_v11  ;;  %985 = vmatprep.subr.mxu0 %v1339_v44 }
  0xbb   :  { %1067 = vmatpush3.msra.mxu1 %v1187_v11  ;;  %986 = vmatpush3.msra.mxu0 %v1339_v44 }
  0xbc   :  { %1068 = vmatprep.subr.mxu1 %v1192_v15  ;;  %987 = vmatprep.subr.mxu0 %v1349_v49 }
  0xbd   :  { %1069 = vmatpush3.msra.mxu1 %v1192_v15  ;;  %988 = vmatpush3.msra.mxu0 %v1349_v49 }
  0xbe   :  { %1070 = vmatprep.subr.mxu1 %v1208_v24  ;;  %990 = vmatmul.mubr.f32.vlgmr.msra.gmra.mxu0 %v1401_v2 }
  0xbf   :  { %1027 = vmatprep.subr.mxu0 %v1203_v22  ;;  %1071 = vmatpush3.msra.mxu1 %v1208_v24 }
  0xc0   :  { %1028 = vmatpush3.msra.mxu0 %v1203_v22  ;;  %1059 = vmatprep.mubr.msk.f32.mxu0 %vm44_vm4, %v1154_v47 }
  0xc1   :  { %1072 = vmatprep.subr.mxu1 %v1210_v25  ;;  %1029 = vmatprep.subr.mxu0 %v1214_v26 }
  0xc2   :  { %1073 = vmatpush3.msra.mxu1 %v1210_v25  ;;  %1030 = vmatpush3.msra.mxu0 %v1214_v26 }
  0xc3   :  { %1074 = vmatprep.subr.mxu1 %v1220_v28  ;;  %1031 = vmatprep.subr.mxu0 %v1217_v27 }
  0xc4   :  { %1075 = vmatpush3.msra.mxu1 %v1220_v28  ;;  %1032 = vmatpush3.msra.mxu0 %v1217_v27 }
  0xc5   :  { %1076 = vmatprep.subr.mxu1 %v1222_v29  ;;  %1033 = vmatprep.subr.mxu0 %v1227_v31 }
  0xc6   :  { %1077 = vmatpush3.msra.mxu1 %v1222_v29  ;;  %1034 = vmatpush3.msra.mxu0 %v1227_v31 }
  0xc7   :  { %1078 = vmatprep.subr.mxu1 %v1262_v50  ;;  %1035 = vmatprep.subr.mxu0 %v1250_v41 }
  0xc8   :  { %1079 = vmatpush3.msra.mxu1 %v1262_v50  ;;  %1036 = vmatpush3.msra.mxu0 %v1250_v41 }
  0xc9   :  { %1080 = vmatprep.subr.mxu1 %v1269_v52  ;;  %1037 = vmatprep.subr.mxu0 %v1253_v42 }
  0xca   :  { %1081 = vmatpush3.msra.mxu1 %v1269_v52  ;;  %1038 = vmatpush3.msra.mxu0 %v1253_v42 }
  0xcb   :  { %1082 = vmatprep.subr.mxu1 %v1271_v53  ;;  %1039 = vmatprep.subr.mxu0 %v1257_v46 }
  0xcc   :  { %1083 = vmatpush3.msra.mxu1 %v1271_v53  ;;  %1040 = vmatpush3.msra.mxu0 %v1257_v46 }
  0xcd   :  { %1084 = vmatprep.subr.mxu1 %v1279_v58  ;;  %1041 = vmatprep.subr.mxu0 %v1266_v51 }
  0xce   :  { %1085 = vmatpush3.msra.mxu1 %v1279_v58  ;;  %1042 = vmatpush3.msra.mxu0 %v1266_v51 }
  0xcf   :  { %1086 = vmatprep.subr.mxu1 %v1294_v1  ;;  %1043 = vmatprep.subr.mxu0 %v1288_v63 }
  0xd0   :  { %1087 = vmatpush3.msra.mxu1 %v1294_v1  ;;  %1044 = vmatpush3.msra.mxu0 %v1288_v63 }
  0xd1   :  { %1088 = vmatprep.subr.mxu1 %v1306_v8  ;;  %1045 = vmatprep.subr.mxu0 %v1300_v6 }
  0xd2   :  { %1089 = vmatpush3.msra.mxu1 %v1306_v8  ;;  %1046 = vmatpush3.msra.mxu0 %v1300_v6 }
  0xd3   :  { %1090 = vmatprep.subr.mxu1 %v1318_v18  ;;  %1047 = vmatprep.subr.mxu0 %v1312_v16 }
  0xd4   :  { %1091 = vmatpush3.msra.mxu1 %v1318_v18  ;;  %1048 = vmatpush3.msra.mxu0 %v1312_v16 }
  0xd5   :  { %1092 = vmatprep.subr.mxu1 %v1330_v38  ;;  %1049 = vmatprep.subr.mxu0 %v1324_v34 }
  0xd6   :  { %1093 = vmatpush3.msra.mxu1 %v1330_v38  ;;  %1050 = vmatpush3.msra.mxu0 %v1324_v34 }
  0xd7   :  { %1095 = vmatmul.mubr.msk.f32.vlgmr.msra.gmra.mxu1 %vm45_vm5, %v1154_v47  ;;  %1051 = vmatprep.subr.mxu0 %v1336_v43 }
  0xd8   :  { %1052 = vmatpush3.msra.mxu0 %v1336_v43 }
  0xd9   :  { %1053 = vmatprep.subr.mxu0 %v1346_v48 }
  0xda   :  { %1054 = vmatpush3.msra.mxu0 %v1346_v48 }
  0xdb   :  { %1055 = vmatprep.subr.mxu0 %v1356_v56 }
  0xdc   :  { %1056 = vmatpush3.msra.mxu0 %v1356_v56 }
  0xdd   :  { %1057 = vmatprep.subr.mxu0 %v1363_v62 }
  0xde   :  { %1058 = vmatpush3.msra.mxu0 %v1363_v62 }
  0xdf   :  { %1060 = vmatmul.mubr.msk.f32.vlgmr.msra.gmra.mxu0 %vm45_vm5, %v1154_v47 }
 0x154   :  { %v956_v10 = vpop.f32.mrf.mxu1 }
 0x156   :  { %v314_v15 = vpop.f32.mrf.mxu1 }
 0x15d   :  { %v921_v4 = vpop.f32.mrf.mxu0 }
 0x15e   :  { %v321_v20 = vadd.f32 %v956_v10, %v921_v4 }
 0x15f   :  { %v153_v11 = vpop.f32.mrf.mxu0 }
 0x160   :  { %v315_v23 = vadd.f32 %v314_v15, %v153_v11 }
 0x175   :  { %v1026_v21 = vpop.f32.mrf.mxu1 }
 0x177   :  { %v520_v26 = vpop.f32.mrf.mxu1 }
 0x17e   :  { %v991_v14 = vpop.f32.mrf.mxu0 }
 0x17f   :  { %v432_v24 = vadd.f32 %v991_v14, %v321_v20 }
 0x180   :  { %v424_v22 = vpop.f32.mrf.mxu0 }
 0x181   :  { %v425_v25 = vadd.f32 %v424_v22, %v315_v23  ;;  %v529_v27 = vadd.f32 %v1026_v21, %v432_v24 }
 0x183   :  { %v521_v32 = vadd.f32 %v520_v26, %v425_v25 }
 0x197   :  { %v1096_v28 = vpop.f32.mrf.mxu1 }
 0x199   :  { %v740_v41 = vpop.f32.mrf.mxu1 }
 0x19f   :  { %v1061_v29 = vpop.f32.mrf.mxu0 }
 0x1a0   :  { %v654_v31 = vadd.f32 %v1061_v29, %v529_v27 }
 0x1a1   :  { %v647_v33 = vpop.f32.mrf.mxu0 }
 0x1a2   :  { %v747_v36 = vadd.f32 %v1096_v28, %v654_v31  ;;  %v648_v37 = vadd.f32 %v647_v33, %v521_v32 }
 0x1a4   :  { %v751_v42 = vmul.f32 11.313708, %v747_v36  ;;  %v741_v46 = vadd.f32 %v740_v41, %v648_v37 }
 0x1a6   :  { %753 = vst [vmem:[#allocation5 + $0x8] sm:$0xff] %v751_v42  ;;  %v750_v50 = vmul.f32 11.313708, %v741_v46 }
 0x1a8   :  { %752 = vst [vmem:[#allocation5] sm:$0xff] %v750_v50 }
 0x1a9   :  { %1136 = shalt.err (!%p1133_p9)
}
 0x1aa   :  { %765 = dma.vmem_to_hbm [thread:$0]  %s760_s1, 256, %s1556_s2, [#allocation4], %s1150_s12, %s1150_s12, %s1151_s13  }
 0x1ab   :  { %1147 = dma.done.wait [#allocation4], 256  }
 0x1ac   :  { %1148 = vsyncadd [#allocation4], 4294967040 }
 0x1ad   :  { %769 = vsyncpa [#allocation3], 1 }
 0x1ae   :  { %770 = vsyncpa [#allocation4], 1 }

</bundles_post_ra>
